<compile_context>
chip_gen: v7x
topology: tpu7x:2x2x1
jax: 0.10.0
libtpu: 0.0.40
codegen_flags: <defaults>
</compile_context>

<pallas_src>
import functools

import jax
import jax.numpy as jnp
from jax.experimental import pallas as pl
from jax.experimental.pallas import tpu as pltpu

_LANE = 128          # lanes per vreg row
_SUB = 8             # sublanes per f32 vreg
_CHUNK_ROWS = 1024   # rows per in-kernel reduce chunk (512 KiB f32 temp max)


def _round_up(v: int, m: int) -> int:
    return ((v + m - 1) // m) * m


def _chip_config():
    """Generation-specific block size / split / VMEM-limit policy."""
    try:
        kind = jax.devices()[0].device_kind.lower()
    except Exception:  # pragma: no cover - defensive
        kind = ""
    if "v7" in kind:
        # 2 TCs, 3.2 TB/s HBM, 64 MiB VMEM/TC (default scoped 32 MiB).
        return {"block_bytes": 8 << 20, "num_splits": 2,
                "vmem_limit": 48 << 20, "split_sem": "core_parallel"}
    if "v6" in kind:
        # 1 TC, 1.4 TB/s HBM, 128 MiB VMEM (default scoped 32 MiB is plenty).
        return {"block_bytes": 8 << 20, "num_splits": 1,
                "vmem_limit": None, "split_sem": "arbitrary"}
    # v5e / v5p / unknown: conservative (v5e default scoped VMEM is 16 MiB).
    return {"block_bytes": 4 << 20, "num_splits": 1,
            "vmem_limit": None, "split_sem": "arbitrary"}


def _dim_semantics(split_sem: str, num_splits: int):
    if num_splits > 1 and split_sem == "core_parallel":
        cp = getattr(pltpu, "CORE_PARALLEL", None)
        arb = getattr(pltpu, "ARBITRARY", "arbitrary")
        if cp is not None:
            return (cp, arb)
        return ("parallel", "arbitrary")
    if num_splits > 1:
        return ("parallel", "arbitrary")
    return ("arbitrary", "arbitrary")


def _itself_loss_kernel(x_ref, o_ref, acc_ref, *, negation: bool,
                        total_rows: int, blocks_per_split: int,
                        chunk_rows: int):
    """Streaming sum-reduce over (block_rows, 128) tiles.

    grid = (num_splits, blocks_per_split).  acc_ref is an (8,128) f32 VMEM
    accumulator.  Full blocks take an unmasked chunked VPU-add path; only the
    last partial block of each split (and any phantom block) pays for the
    row mask.  Cross-lane reduce + optional negation run once per split.
    """
    i = pl.program_id(0)
    k = pl.program_id(1)

    @pl.when(k == 0)
    def _init():
        acc_ref[...] = jnp.zeros_like(acc_ref)

    block_rows = x_ref.shape[0]
    blk = i * blocks_per_split + k                 # unclamped logical block id
    remaining = total_rows - blk * block_rows      # valid rows in this block

    n_chunks, rem = divmod(block_rows, chunk_rows)

    def _add_chunk(r0, nrows):
        # Chunked ref slice -> cast -> sublane-grouped adds into acc_ref.
        acc_ref[...] += jnp.sum(
            x_ref[pl.ds(r0, nrows), :].astype(jnp.float32)
            .reshape(-1, _SUB, _LANE), axis=0)

    def _add_chunk_masked(r0, nrows, valid):
        row_ids = jax.lax.broadcasted_iota(jnp.int32, (nrows, _LANE), 0)
        xb = jnp.where(row_ids < valid,
                       x_ref[pl.ds(r0, nrows), :].astype(jnp.float32),
                       jnp.float32(0.0))
        acc_ref[...] += jnp.sum(xb.reshape(-1, _SUB, _LANE), axis=0)

    # Fast path: every row in this block is valid -> no iota/compare/select.
    @pl.when(remaining >= block_rows)
    def _fast():
        for j in range(n_chunks):                  # static, fully unrolled
            _add_chunk(j * chunk_rows, chunk_rows)
        if rem:
            _add_chunk(n_chunks * chunk_rows, rem)

    # Masked path: partial last block or phantom block (remaining <= 0).
    @pl.when(remaining < block_rows)
    def _masked():
        for j in range(n_chunks):
            _add_chunk_masked(j * chunk_rows, chunk_rows,
                              remaining - j * chunk_rows)
        if rem:
            _add_chunk_masked(n_chunks * chunk_rows, rem,
                              remaining - n_chunks * chunk_rows)

    @pl.when(k == pl.num_programs(1) - 1)
    def _finalize():
        total = jnp.sum(acc_ref[...])
        o_ref[0, 0] = -total if negation else total


@functools.partial(jax.jit, static_argnums=(1, 2, 3, 4, 5))
def _itself_loss_impl(x, negation: bool, block_bytes: int,
                      num_splits_cfg: int, vmem_limit, split_sem: str):
    xf = jnp.asarray(x).reshape(-1)        # native dtype, no wrapper f32 cast
    n = xf.shape[0]
    rows = n // _LANE
    lane_tail = n - rows * _LANE           # < 128 trailing elements

    if rows == 0:                          # tiny/empty input: pure-JAX fallback
        total = jnp.sum(xf.astype(jnp.float32))
        return -total if negation else total

    itemsize = jnp.dtype(xf.dtype).itemsize
    pack = {1: 32, 2: 16}.get(itemsize, 8)              # native sublane packing
    cap = max(pack, (block_bytes // (_LANE * itemsize)) // pack * pack)
    block_rows = min(cap, _round_up(rows, pack))
    chunk_rows = min(_CHUNK_ROWS, block_rows)

    main = xf if lane_tail == 0 else xf[: rows * _LANE]
    x2d = main.reshape(rows, _LANE)

    total_blocks = pl.cdiv(rows, block_rows)
    num_splits = max(1, min(num_splits_cfg, total_blocks))
    bps = pl.cdiv(total_blocks, num_splits)
    last_block = total_blocks - 1

    partials = pl.pallas_call(
        functools.partial(_itself_loss_kernel, negation=negation,
                          total_rows=rows, blocks_per_split=bps,
                          chunk_rows=chunk_rows),
        out_shape=jax.ShapeDtypeStruct((num_splits, 1), jnp.float32),
        grid_spec=pltpu.PrefetchScalarGridSpec(
            num_scalar_prefetch=0,
            grid=(num_splits, bps),
            in_specs=[pl.BlockSpec(
                (block_rows, _LANE),
                # Clamp phantom blocks to the last real block; the kernel's
                # masked path (unclamped id) zeroes them out.
                lambda i, k: (jnp.minimum(i * bps + k, last_block), 0))],
            out_specs=pl.BlockSpec((1, 1), lambda i, k: (i, 0),
                                   memory_space=pltpu.SMEM),
            scratch_shapes=[pltpu.VMEM((_SUB, _LANE), jnp.float32)],
        ),
        compiler_params=pltpu.CompilerParams(
            dimension_semantics=_dim_semantics(split_sem, num_splits),
            vmem_limit_bytes=vmem_limit),
    )(x2d)

    total = jnp.sum(partials)
    if lane_tail:
        t = jnp.sum(xf[rows * _LANE:].astype(jnp.float32))
        total = total + (-t if negation else t)
    return total


def itself_loss(x, negation: bool = True):
    """Pallas equivalent of Itself_loss.forward(x, negation)."""
    cfg = _chip_config()
    try:
        return _itself_loss_impl(x, bool(negation), cfg["block_bytes"],
                                 cfg["num_splits"], cfg["vmem_limit"],
                                 cfg["split_sem"])
    except Exception:
        # CORE_PARALLEL is v7x-specific; fall back to plain "parallel" if the
        # lowering rejects it so the kernel always runs.
        if cfg["split_sem"] == "core_parallel":
            return _itself_loss_impl(x, bool(negation), cfg["block_bytes"],
                                     cfg["num_splits"], cfg["vmem_limit"],
                                     "parallel")
        raise


if __name__ == "__main__":
    key = jax.random.PRNGKey(0)
    k1, k2, k3 = jax.random.split(key, 3)

    # Primary example: NCHW-like f32 input (single block, fast path).
    x = jax.random.normal(k1, (2, 4, 16, 16), dtype=jnp.float32)
    loss = itself_loss(x, negation=True)
    jax.block_until_ready(loss)
    assert jnp.allclose(loss, -jnp.sum(x), rtol=1e-5, atol=1e-3), (loss, -jnp.sum(x))

    loss_pos = itself_loss(x, negation=False)
    jax.block_until_ready(loss_pos)
    assert jnp.allclose(loss_pos, jnp.sum(x), rtol=1e-5, atol=1e-3)

    # Ragged input: sub-128 element tail + masked partial block.
    x2 = jax.random.normal(k2, (3, 5, 7, 11), dtype=jnp.float32)   # 1155 elems
    assert jnp.allclose(itself_loss(x2), -jnp.sum(x2), rtol=1e-5, atol=1e-3)

    # Multi-block + forced 2-way split + clamped phantom block + masked tail.
    x3 = jax.random.normal(k3, (2, 4, 16, 33), dtype=jnp.float32)  # 33 rows of 128
    got3 = _itself_loss_impl(x3, True, 16 * _LANE * 4, 2, None, "parallel")
    assert jnp.allclose(got3, -jnp.sum(x3), rtol=1e-5, atol=1e-3)

    # Multi-chunk fast path inside a single block.
    x4 = jax.random.normal(k3, (16, 16, 32, 32), dtype=jnp.float32)  # 2048 rows
    got4 = itself_loss(x4, negation=True)
    assert jnp.allclose(got4, -jnp.sum(x4), rtol=1e-4, atol=1e-2)

    # bf16 input streams natively (16-row packing); accumulation is f32.
    xb = jax.random.normal(k1, (2, 4, 16, 16)).astype(jnp.bfloat16)
    got_b = itself_loss(xb, negation=True)
    assert jnp.allclose(got_b, -jnp.sum(xb.astype(jnp.float32)), rtol=1e-4, atol=1e-2)

    # Tiny input (no full 128-lane row): wrapper fallback path.
    x_tiny = jax.random.normal(k2, (5,), dtype=jnp.float32)
    assert jnp.allclose(itself_loss(x_tiny), -jnp.sum(x_tiny), rtol=1e-5, atol=1e-5)

    print("KERNEL_OK")
</pallas_src>

<mosaic_0001>
module attributes {stable_mosaic.version = 11 : i64} {
  func.func @_itself_loss_kernel(%arg0: i32, %arg1: i32, %arg2: memref<16x128xf32, #tpu.memory_space<vmem>>, %arg3: memref<1x1xf32, #tpu.memory_space<smem>>, %arg4: memref<8x128xf32, #tpu.memory_space<vmem>>) attributes {dimension_semantics = [#tpu.dimension_semantics<arbitrary>, #tpu.dimension_semantics<arbitrary>], iteration_bounds = array<i64: 1, 1>, scalar_prefetch = 0 : i64, scratch_operands = 1 : i64, tpu.core_type = #tpu.core_type<tc>, window_params = [{transform_indices = @transform_0, window_bounds = array<i64: 16, 128>}, {transform_indices = @transform_1, window_bounds = array<i64: 1, 1>}]} {
    %c0_i32 = arith.constant 0 : i32
    %0 = arith.cmpi eq, %arg1, %c0_i32 : i32
    %1 = arith.extui %0 : i1 to i32
    %c0_i32_0 = arith.constant 0 : i32
    %2 = arith.cmpi ne, %1, %c0_i32_0 : i32
    scf.if %2 {
      %cst = arith.constant 0.000000e+00 : f32
      %16 = vector.broadcast %cst : f32 to vector<8x128xf32>
      %c0 = arith.constant 0 : index
      %c0_8 = arith.constant 0 : index
      %17 = vector.load %arg4[%c0, %c0_8] : memref<8x128xf32, #tpu.memory_space<vmem>>, vector<8x128xf32>
      tpu.vector_store %arg4[%c0, %c0_8], %16 {strides = array<i32>} : memref<8x128xf32, #tpu.memory_space<vmem>>, vector<8x128xf32>,
    } else {
    }
    %c1_i32 = arith.constant 1 : i32
    %3 = arith.muli %arg0, %c1_i32 : i32
    %4 = arith.addi %3, %arg1 : i32
    %c16_i32 = arith.constant 16 : i32
    %5 = arith.muli %4, %c16_i32 : i32
    %c16_i32_1 = arith.constant 16 : i32
    %6 = arith.subi %c16_i32_1, %5 : i32
    %c16_i32_2 = arith.constant 16 : i32
    %7 = arith.cmpi sge, %6, %c16_i32_2 : i32
    %8 = arith.extui %7 : i1 to i32
    %c0_i32_3 = arith.constant 0 : i32
    %9 = arith.cmpi ne, %8, %c0_i32_3 : i32
    scf.if %9 {
      %c0 = arith.constant 0 : index
      %c0_8 = arith.constant 0 : index
      %16 = vector.load %arg4[%c0, %c0_8] : memref<8x128xf32, #tpu.memory_space<vmem>>, vector<8x128xf32>
      %c0_9 = arith.constant 0 : index
      %c0_10 = arith.constant 0 : index
      %17 = vector.load %arg2[%c0_9, %c0_10] : memref<16x128xf32, #tpu.memory_space<vmem>>, vector<16x128xf32>
      %18 = vector.shape_cast %17 : vector<16x128xf32> to vector<2x8x128xf32>
      %cst = arith.constant dense<0.000000e+00> : vector<8x128xf32>
      %19 = vector.multi_reduction <add>, %18, %cst [0] : vector<2x8x128xf32> to vector<8x128xf32>
      %20 = arith.addf %16, %19 : vector<8x128xf32>
      %c0_11 = arith.constant 0 : index
      %c0_12 = arith.constant 0 : index
      %21 = vector.load %arg4[%c0_11, %c0_12] : memref<8x128xf32, #tpu.memory_space<vmem>>, vector<8x128xf32>
      tpu.vector_store %arg4[%c0_11, %c0_12], %20 {strides = array<i32>} : memref<8x128xf32, #tpu.memory_space<vmem>>, vector<8x128xf32>,
    } else {
    }
    %c16_i32_4 = arith.constant 16 : i32
    %10 = arith.cmpi slt, %6, %c16_i32_4 : i32
    %11 = arith.extui %10 : i1 to i32
    %c0_i32_5 = arith.constant 0 : i32
    %12 = arith.cmpi ne, %11, %c0_i32_5 : i32
    scf.if %12 {
      %c0_i32_8 = arith.constant 0 : i32
      %16 = arith.subi %6, %c0_i32_8 : i32
      %17 = tpu.iota {dimensions = array<i32: 0>} : vector<16x128xi32>
      %18 = vector.broadcast %16 : i32 to vector<16x128xi32>
      %19 = arith.cmpi slt, %17, %18 : vector<16x128xi32>
      %c0 = arith.constant 0 : index
      %c0_9 = arith.constant 0 : index
      %20 = vector.load %arg2[%c0, %c0_9] : memref<16x128xf32, #tpu.memory_space<vmem>>, vector<16x128xf32>
      %cst = arith.constant 0.000000e+00 : f32
      %21 = vector.broadcast %cst : f32 to vector<16x128xf32>
      %22 = arith.select %19, %20, %21 : vector<16x128xi1>, vector<16x128xf32>
      %c0_10 = arith.constant 0 : index
      %c0_11 = arith.constant 0 : index
      %23 = vector.load %arg4[%c0_10, %c0_11] : memref<8x128xf32, #tpu.memory_space<vmem>>, vector<8x128xf32>
      %24 = vector.shape_cast %22 : vector<16x128xf32> to vector<2x8x128xf32>
      %cst_12 = arith.constant dense<0.000000e+00> : vector<8x128xf32>
      %25 = vector.multi_reduction <add>, %24, %cst_12 [0] : vector<2x8x128xf32> to vector<8x128xf32>
      %26 = arith.addf %23, %25 : vector<8x128xf32>
      %c0_13 = arith.constant 0 : index
      %c0_14 = arith.constant 0 : index
      %27 = vector.load %arg4[%c0_13, %c0_14] : memref<8x128xf32, #tpu.memory_space<vmem>>, vector<8x128xf32>
      tpu.vector_store %arg4[%c0_13, %c0_14], %26 {strides = array<i32>} : memref<8x128xf32, #tpu.memory_space<vmem>>, vector<8x128xf32>,
    } else {
    }
    %c0_i32_6 = arith.constant 0 : i32
    %13 = arith.cmpi eq, %arg1, %c0_i32_6 : i32
    %14 = arith.extui %13 : i1 to i32
    %c0_i32_7 = arith.constant 0 : i32
    %15 = arith.cmpi ne, %14, %c0_i32_7 : i32
    scf.if %15 {
      %c0 = arith.constant 0 : index
      %c0_8 = arith.constant 0 : index
      %16 = vector.load %arg4[%c0, %c0_8] : memref<8x128xf32, #tpu.memory_space<vmem>>, vector<8x128xf32>
      %17 = vector.shape_cast %16 : vector<8x128xf32> to vector<1x8x128xf32>
      %cst = arith.constant dense<0.000000e+00> : vector<1xf32>
      %18 = vector.multi_reduction <add>, %17, %cst [1, 2] : vector<1x8x128xf32> to vector<1xf32>
      %19 = vector.shape_cast %18 : vector<1xf32> to vector<1x1x1xf32>
      %20 = vector.extract %19[0, 0, 0] : f32 from vector<1x1x1xf32>
      %cst_9 = arith.constant 0.000000e+00 : f32
      %21 = arith.subf %cst_9, %20 : f32
      %c0_10 = arith.constant 0 : index
      %c0_11 = arith.constant 0 : index
      %22 = memref.load %arg3[%c0_10, %c0_11] : memref<1x1xf32, #tpu.memory_space<smem>>
      memref.store %21, %arg3[%c0_10, %c0_11] : memref<1x1xf32, #tpu.memory_space<smem>>
    } else {
    }
    return
  }
  func.func @transform_0(%arg0: i32, %arg1: i32) -> (i32, i32) {
    %c1_i32 = arith.constant 1 : i32
    %0 = arith.muli %arg0, %c1_i32 : i32
    %1 = arith.addi %0, %arg1 : i32
    %c0_i32 = arith.constant 0 : i32
    %2 = arith.minsi %1, %c0_i32 : i32
    %c0_i32_0 = arith.constant 0 : i32
    %c0_i32_1 = arith.constant 0 : i32
    return %2, %c0_i32_0 : i32, i32
  }
  func.func @transform_1(%arg0: i32, %arg1: i32) -> (i32, i32) {
    %c0_i32 = arith.constant 0 : i32
    %c0_i32_0 = arith.constant 0 : i32
    return %arg0, %c0_i32 : i32, i32
  }
}

</mosaic_0001>

<bundles_post_ra>
// kernel: _itself_loss_impl.1
= control target key start
LH: loop header
LB: loop body
LE: loop exit
PB: predicated region body
PF: predicated region fallthrough
CT: control target
= control target key end

     0   :  { %s156_s0 = inlined_call_operand.vmem [shape: f32[16,128], index: 0, kind: input, shape index: {}]   ;;  %s157_s1 = inlined_call_operand.hbm [shape: f32[1,1], index: 1, kind: output, shape index: {}]  }
   0x1   :  { %v54_v0 = vld [vmem:[%s156_s0] sm:$0xff]  ;;  %v55_v1 = vld [vmem:[%s156_s0 + $0x8] sm:$0xff] }
   0x2   :  { %6 = vsyncpa [#allocation4], 0  ;;  %v56_v2 = vadd.f32 %v55_v1, %v54_v0  ;;  %s115_s14 = scalar_lea.hbm %s157_s1, 16 }
   0x3   :  { %p116_p0 = scmp.ne.s32.totalorder %s157_s1, %s115_s14  ;;  %p119_p1 = scmp.lt.u32.totalorder %s115_s14, %s157_s1 }
   0x4   :  { %81 = vadd.xlane.f32.xlu0 %v56_v2 }
   0x5   :  { %p121_p2 = pnand %p119_p1, %p116_p0 }
  0x91   :  { %v82_v3 = vpop.xlane.xlu0 %81 }
  0x92   :  { %v83_v4 = vrot.slane %v82_v3, 4 }
  0x94   :  { %v84_v5 = vadd.f32 %v83_v4, %v82_v3 }
  0x96   :  { %v85_v6 = vrot.slane %v84_v5, 2 }
  0x98   :  { %v86_v7 = vadd.f32 %v85_v6, %v84_v5 }
  0x9a   :  { %v87_v8 = vrot.slane %v86_v7, 1 }
  0x9c   :  { %v88_v9 = vadd.f32 %v87_v8, %v86_v7 }
  0x9e   :  { %112 = vpush %v88_v9 }
  0xcf   :  { %s113_s10 = spop %112 }
  0xd0   :  { %s90_s11 = ssub.f32 0.0, %s113_s10 }
  0xd2   :  { %92 = sst [smem:[#allocation3]] %s90_s11 }
  0xd3   :  { %124 = shalt.err (!%p121_p2)
}
  0xd4   :  { %s127_s18 = smov [#allocation3]  }
  0xd5   :  { %100 = dma.smem_to_hbm %s127_s18, 16, %s157_s1, [#allocation4]  }
  0xd6   :  { %125 = dma.done.wait [#allocation4], 16  }
  0xd7   :  { %126 = vsyncadd [#allocation4], 4294967280 }
  0xd8   :  { %104 = sfence }
  0xd9   :  { %105 = vsyncpa [#allocation4], 1 }

</bundles_post_ra>
